<compile_context>
chip_gen: v7x
topology: tpu7x:2x2x1
jax: 0.10.0
libtpu: 0.0.40
codegen_flags: <defaults>
</compile_context>

<pallas_src>
import math
import functools

import jax
import jax.numpy as jnp
from jax.experimental import pallas as pl
from jax.experimental.pallas import tpu as pltpu


def _pe_kernel(inv_freq_ref, phase_ref, sin_b_ref, cos_b_ref, o_ref, *, tile_t: int):
    # A(d) = row0 * inv_freq[d] + phase[d]  -> only ~2*d_pad sin/cos per *tile*.
    row0 = (pl.program_id(0) * tile_t).astype(jnp.float32)
    a = row0 * inv_freq_ref[...] + phase_ref[...]          # (1, d_pad)
    sin_a = jnp.sin(a)
    cos_a = jnp.cos(a)
    # sin(A + B) = sinA*cosB + cosA*sinB : 2 mul + 1 add per element (VPU),
    # so the tile is store-bound, not VALU-bound.
    o_ref[...] = cos_b_ref[...] * sin_a + sin_b_ref[...] * cos_a


@functools.lru_cache(maxsize=None)
def _pe_table(length: int, d_model: int) -> jax.Array:
    """Builds pe[:, :length] == [1, length, d_model] float32 (cached per shape)."""
    # Lane-dense feature dim: pad D up to a multiple of 128.
    d_pad = ((d_model + 127) // 128) * 128
    t_pad_min = ((length + 7) // 8) * 8

    # Row tile: ~2 MiB output blocks (cap 4096 rows), multiple of 8.  Total
    # VMEM ~ 2x out block + 2x2 table blocks ~ 6x block <= 12 MiB.
    max_block_bytes = 2 * 1024 * 1024
    tile_t = max(8, min(4096, (max_block_bytes // (d_pad * 4)) // 8 * 8))
    if t_pad_min >= 16:
        # Keep >= 2 grid steps so the "parallel" axis shards over v7x's 2 TCs.
        half = (((t_pad_min + 1) // 2) + 7) // 8 * 8
        tile_t = min(tile_t, half)
    else:
        tile_t = min(tile_t, t_pad_min)
    grid_t = pl.cdiv(length, tile_t)
    t_pad = grid_t * tile_t

    # Host-side constants (computed once per (T, D), cached by lru_cache):
    #   inv_freq[d] = exp(-(d & ~1) * ln(10000)/D)
    #   phase[d]    = 0 for even d, pi/2 for odd d   (cos(x) == sin(x + pi/2))
    # Padded lanes are zeroed -> kernel writes 0 there (discarded by the slice).
    d_idx = jnp.arange(d_pad, dtype=jnp.int32)
    two_k = (d_idx & (-2)).astype(jnp.float32)
    inv_freq = jnp.exp(two_k * jnp.float32(-math.log(10000.0) / d_model))
    phase = jnp.where((d_idx & 1) == 0, 0.0, math.pi / 2.0).astype(jnp.float32)
    valid = d_idx < d_model
    inv_freq = jnp.where(valid, inv_freq, 0.0).astype(jnp.float32)
    phase = jnp.where(valid, phase, 0.0).astype(jnp.float32)

    # Tile-invariant tables B(r, d) = r * inv_freq[d]  (one sin/cos pass host-side).
    r = jnp.arange(tile_t, dtype=jnp.float32)[:, None]
    b = r * inv_freq[None, :]
    sin_b = jnp.sin(b)
    cos_b = jnp.cos(b)
    inv_freq = inv_freq[None, :]
    phase = phase[None, :]

    pe = pl.pallas_call(
        functools.partial(_pe_kernel, tile_t=tile_t),
        out_shape=jax.ShapeDtypeStruct((t_pad, d_pad), jnp.float32),
        grid_spec=pltpu.PrefetchScalarGridSpec(
            num_scalar_prefetch=0,
            grid=(grid_t,),
            in_specs=[
                pl.BlockSpec((1, d_pad), lambda i: (0, 0)),        # inv_freq
                pl.BlockSpec((1, d_pad), lambda i: (0, 0)),        # phase
                pl.BlockSpec((tile_t, d_pad), lambda i: (0, 0)),   # sin_b (resident)
                pl.BlockSpec((tile_t, d_pad), lambda i: (0, 0)),   # cos_b (resident)
            ],
            out_specs=pl.BlockSpec((tile_t, d_pad), lambda i: (i, 0)),
        ),
        compiler_params=pltpu.CompilerParams(
            dimension_semantics=("parallel",),
            vmem_limit_bytes=32 * 1024 * 1024,
        ),
    )(inv_freq, phase, sin_b, cos_b)

    if (t_pad, d_pad) != (length, d_model):
        pe = pe[:length, :d_model]
    return pe[None, :, :]  # [1, T, D]


def positional_encoding(x: jax.Array) -> jax.Array:
    """Equivalent of Positional_Encoding(d_model).forward(x) for x: [N, T, D]."""
    # Output depends only on shapes (N unused); table is cached per (T, D).
    return _pe_table(int(x.shape[1]), int(x.shape[2]))


def _reference_pe(length: int, d_model: int) -> jnp.ndarray:
    # Pure-JAX reference mirroring the PyTorch buffer construction.
    position = jnp.arange(length, dtype=jnp.float32)[:, None]
    div_term = jnp.exp(
        jnp.arange(0, d_model, 2, dtype=jnp.float32) * (-math.log(10000.0) / d_model)
    )
    pe = jnp.zeros((length, d_model), dtype=jnp.float32)
    pe = pe.at[:, 0::2].set(jnp.sin(position * div_term))
    pe = pe.at[:, 1::2].set(jnp.cos(position * div_term)[:, : d_model // 2])
    return pe[None]


if __name__ == "__main__":
    key = jax.random.PRNGKey(0)
    N, T, D = 2, 8, 32  # x: [N, T, D]
    x = jax.random.normal(key, (N, T, D), dtype=jnp.float32)

    out = positional_encoding(x)
    out = jax.block_until_ready(out)

    ref = _reference_pe(T, D)
    assert out.shape == (1, T, D), out.shape
    assert out.dtype == jnp.float32
    assert jnp.allclose(out, ref, atol=1e-5, rtol=1e-5)

    # Secondary check: multi-tile grid (grid_t >= 2) and larger angles, to
    # exercise the angle-addition factorization away from t == 0.  Slightly
    # looser atol: both the kernel and the reference round the f32 angle
    # argument, and the rounding paths differ (~few * 1e-5 worst case here).
    T2, D2 = 300, 64
    x2 = jnp.zeros((1, T2, D2), dtype=jnp.float32)
    out2 = jax.block_until_ready(positional_encoding(x2))
    ref2 = _reference_pe(T2, D2)
    assert out2.shape == (1, T2, D2), out2.shape
    assert jnp.allclose(out2, ref2, atol=2e-4, rtol=1e-5)

    print("KERNEL_OK")
</pallas_src>

<mosaic_0001>
module attributes {stable_mosaic.version = 11 : i64} {
  func.func @_pe_kernel(%arg0: i32, %arg1: memref<1x128xf32, #tpu.memory_space<vmem>>, %arg2: memref<1x128xf32, #tpu.memory_space<vmem>>, %arg3: memref<8x128xf32, #tpu.memory_space<vmem>>, %arg4: memref<8x128xf32, #tpu.memory_space<vmem>>, %arg5: memref<8x128xf32, #tpu.memory_space<vmem>>) attributes {dimension_semantics = [#tpu.dimension_semantics<parallel>], iteration_bounds = array<i64: 1>, scalar_prefetch = 0 : i64, scratch_operands = 0 : i64, tpu.core_type = #tpu.core_type<tc>, window_params = [{pipeline_mode = #tpu.pipeline_mode<synchronous>, transform_indices = @transform_0, window_bounds = array<i64: 1, 128>}, {pipeline_mode = #tpu.pipeline_mode<synchronous>, transform_indices = @transform_1, window_bounds = array<i64: 1, 128>}, {pipeline_mode = #tpu.pipeline_mode<synchronous>, transform_indices = @transform_2, window_bounds = array<i64: 8, 128>}, {pipeline_mode = #tpu.pipeline_mode<synchronous>, transform_indices = @transform_3, window_bounds = array<i64: 8, 128>}, {transform_indices = @transform_4, window_bounds = array<i64: 8, 128>}]} {
    %c8_i32 = arith.constant 8 : i32
    %0 = arith.muli %arg0, %c8_i32 : i32
    %1 = arith.sitofp %0 : i32 to f32
    %c0 = arith.constant 0 : index
    %c0_0 = arith.constant 0 : index
    %2 = vector.load %arg1[%c0, %c0_0] : memref<1x128xf32, #tpu.memory_space<vmem>>, vector<1x128xf32>
    %3 = vector.broadcast %1 : f32 to vector<1x128xf32>
    %4 = arith.mulf %3, %2 : vector<1x128xf32>
    %c0_1 = arith.constant 0 : index
    %c0_2 = arith.constant 0 : index
    %5 = vector.load %arg2[%c0_1, %c0_2] : memref<1x128xf32, #tpu.memory_space<vmem>>, vector<1x128xf32>
    %6 = arith.addf %4, %5 : vector<1x128xf32>
    %7 = math.sin %6 : vector<1x128xf32>
    %8 = math.cos %6 : vector<1x128xf32>
    %c0_3 = arith.constant 0 : index
    %c0_4 = arith.constant 0 : index
    %9 = vector.load %arg4[%c0_3, %c0_4] : memref<8x128xf32, #tpu.memory_space<vmem>>, vector<8x128xf32>
    %10 = vector.broadcast %7 : vector<1x128xf32> to vector<8x128xf32>
    %11 = arith.mulf %9, %10 : vector<8x128xf32>
    %c0_5 = arith.constant 0 : index
    %c0_6 = arith.constant 0 : index
    %12 = vector.load %arg3[%c0_5, %c0_6] : memref<8x128xf32, #tpu.memory_space<vmem>>, vector<8x128xf32>
    %13 = vector.broadcast %8 : vector<1x128xf32> to vector<8x128xf32>
    %14 = arith.mulf %12, %13 : vector<8x128xf32>
    %15 = arith.addf %11, %14 : vector<8x128xf32>
    %c0_7 = arith.constant 0 : index
    %c0_8 = arith.constant 0 : index
    %16 = vector.load %arg5[%c0_7, %c0_8] : memref<8x128xf32, #tpu.memory_space<vmem>>, vector<8x128xf32>
    tpu.vector_store %arg5[%c0_7, %c0_8], %15 {strides = array<i32>} : memref<8x128xf32, #tpu.memory_space<vmem>>, vector<8x128xf32>,
    return
  }
  func.func @transform_0(%arg0: i32) -> (i32, i32) {
    %c0_i32 = arith.constant 0 : i32
    %c0_i32_0 = arith.constant 0 : i32
    %c0_i32_1 = arith.constant 0 : i32
    return %c0_i32, %c0_i32_0 : i32, i32
  }
  func.func @transform_1(%arg0: i32) -> (i32, i32) {
    %c0_i32 = arith.constant 0 : i32
    %c0_i32_0 = arith.constant 0 : i32
    %c0_i32_1 = arith.constant 0 : i32
    return %c0_i32, %c0_i32_0 : i32, i32
  }
  func.func @transform_2(%arg0: i32) -> (i32, i32) {
    %c0_i32 = arith.constant 0 : i32
    %c0_i32_0 = arith.constant 0 : i32
    %c0_i32_1 = arith.constant 0 : i32
    return %c0_i32, %c0_i32_0 : i32, i32
  }
  func.func @transform_3(%arg0: i32) -> (i32, i32) {
    %c0_i32 = arith.constant 0 : i32
    %c0_i32_0 = arith.constant 0 : i32
    %c0_i32_1 = arith.constant 0 : i32
    return %c0_i32, %c0_i32_0 : i32, i32
  }
  func.func @transform_4(%arg0: i32) -> (i32, i32) {
    %c0_i32 = arith.constant 0 : i32
    %c0_i32_0 = arith.constant 0 : i32
    return %arg0, %c0_i32 : i32, i32
  }
}

</mosaic_0001>

<bundles_post_ra>
// kernel: tpu_custom_call.1
= control target key start
LH: loop header
LB: loop body
LE: loop exit
PB: predicated region body
PF: predicated region fallthrough
CT: control target
= control target key end

     0   :  { %9 = vsyncpa [#allocation3], 0  ;;  %s484_s0 = inlined_call_operand.hbm [shape: f32[1,128], index: 0, kind: input, shape index: {}]   ;;  %s485_s1 = inlined_call_operand.vmem [shape: f32[1,128], index: 1, kind: input, shape index: {}]   ;;  %s486_s2 = inlined_call_operand.hbm [shape: f32[8,128], index: 2, kind: input, shape index: {}]   ;;  %s487_s3 = inlined_call_operand.vmem [shape: f32[8,128], index: 3, kind: input, shape index: {}]   ;;  %s488_s4 = inlined_call_operand.hbm [shape: f32[8,128], index: 4, kind: output, shape index: {}]  }
   0x1   :  { %10 = vsyncpa [#allocation6], 0 }
   0x2   :  { %11 = vsyncpa [#allocation4], 0  ;;  %s387_s15 = smov [#allocation2]   ;;  %s388_s17 = smov [#allocation5]  }
   0x3   :  { %s18_s16 = sshll.u32 %s387_s15, 4  ;;  %s30_s18 = sshll.u32 %s388_s17, 4  ;;  %s19_s16 = int_to_ptr.vmem [resolvable:$true] %s18_s16  ;;  %s31_s18 = int_to_ptr.vmem [resolvable:$true] %s30_s18 }
   0x4   :  { %s315_s21 = scalar_lea.hbm %s484_s0, 16 }
   0x5   :  { %p316_p0 = scmp.ne.s32.totalorder %s484_s0, %s315_s21  ;;  %p319_p1 = scmp.lt.u32.totalorder %s315_s21, %s484_s0 }
   0x7   :  { %p321_p2 = pnand %p319_p1, %p316_p0 }
   0x9   :  { %324 = shalt.err (!%p321_p2)
}
   0xa   :  { %s325_s26 = scalar_lea.vmem %s19_s16, 16  ;;  %s329_s27 = scalar_lea.vmem %s19_s16, 32 }
   0xb   :  { %p326_p3 = scmp.ne.s32.totalorder %s19_s16, %s325_s26  ;;  %p330_p4 = scmp.lt.s32.totalorder %s19_s16, %s19_s16 }
   0xc   :  { %p331_p5 = scmp.lt.s32.totalorder %s329_s27, %s325_s26 }
   0xe   :  { %p332_p6 = por %p331_p5, %p330_p4 }
  0x10   :  { %p333_p7 = pnand %p332_p6, %p326_p3 }
  0x12   :  { %336 = shalt.err (!%p333_p7)
}
  0x13   :  { %21 = dma.hbm_to_vmem [thread:$0]  %s484_s0, 16, %s19_s16, [#allocation3]  }
  0x14   :  { %s337_s6 = scalar_lea.hbm %s486_s2, 128 }
  0x15   :  { %p338_p8 = scmp.ne.s32.totalorder %s486_s2, %s337_s6  ;;  %p341_p9 = scmp.lt.u32.totalorder %s337_s6, %s486_s2 }
  0x17   :  { %p343_p10 = pnand %p341_p9, %p338_p8 }
  0x19   :  { %346 = shalt.err (!%p343_p10)
}
  0x1a   :  { %s347_s11 = scalar_lea.vmem %s31_s18, 128  ;;  %p352_p12 = scmp.lt.s32.totalorder %s31_s18, %s31_s18 }
  0x1b   :  { %p348_p11 = scmp.ne.s32.totalorder %s31_s18, %s347_s11  ;;  %p353_p13 = scmp.lt.s32.totalorder %s347_s11, %s347_s11 }
  0x1d   :  { %p354_p0 = por %p353_p13, %p352_p12 }
  0x1f   :  { %p355_p1 = pnand %p354_p0, %p348_p11 }
  0x21   :  { %358 = shalt.err (!%p355_p1)
}
  0x22   :  { %33 = dma.hbm_to_vmem [thread:$0]  %s486_s2, 128, %s31_s18, [#allocation6]  }
  0x23   :  { %381 = dma.done.wait [#allocation3], 16  }
  0x24   :  { %382 = vsyncadd [#allocation3], 4294967280 }
  0x25   :  { %383 = dma.done.wait [#allocation6], 128  }
  0x26   :  { %384 = vsyncadd [#allocation6], 4294967168  ;;  %v44_v0 = vld [vmem:[#allocation2] sm:$0x1]  ;;  %v47_v1 = vld [vmem:[%s485_s1] sm:$0x1] }
  0x27   :  { %v46_v2 = vmul.f32 0.0, %v44_v0  ;;  %v389_v15 = vmov 683565275   ;;  %v390_v17 = vmov 2475754826   ;;  %s395_s15 = smov [#allocation7]  }
  0x28   :  { %v391_v19 = vmov 2131351028   ;;  %v392_v21 = vmov 2102212464   ;;  %v393_v23 = vmov 920167782  }
  0x29   :  { %v448_v3 = vadd.f32 %v47_v1, %v46_v2  ;;  %v394_v30 = vmov 1326507024   ;;  %s280_s16 = sshll.u32 %s395_s15, 4  ;;  %s281_s16 = int_to_ptr.vmem [resolvable:$true] %s280_s16 }
  0x2a   :  { %s359_s17 = scalar_lea.vmem %s281_s16, 128  ;;  %p364_p3 = scmp.lt.s32.totalorder %s281_s16, %s281_s16 }
  0x2b   :  { %v52_v4 = vand.u32 2139095040, %v448_v3  ;;  %v49_v6 = vand.u32 2147483647, %v448_v3  ;;  %vm51_vm7 = vcmp.lt.s32.totalorder %v448_v3, 0  ;;  %vm141_vm15 = vweird.f32 %v448_v3  ;;  %p360_p2 = scmp.ne.s32.totalorder %s281_s16, %s359_s17  ;;  %p365_p4 = scmp.lt.s32.totalorder %s359_s17, %s359_s17 }
  0x2d   :  { %v53_v5 = vshrl.u32 %v52_v4, 23  ;;  %v56_v9 = vand.u32 8388607, %v49_v6  ;;  %vm50_vm8 = vcmp.le.f32.partialorder %v49_v6, 0.7853982  ;;  %p366_p5 = por %p365_p4, %p364_p3 }
  0x2f   :  { %v290_v7 = vadd.s32 4294967169, %v53_v5  ;;  %v57_v12 = vor.u32 8388608, %v56_v9  ;;  %p367_p6 = pnand %p366_p5, %p360_p2 }
  0x31   :  { %v59_v8 = vadd.s32 1, %v290_v7  ;;  %v97_v32 = vshll.u32 %v57_v12, 8 }
  0x33   :  { %vm60_vm0 = vcmp.gt.s32.totalorder %v59_v8, 0 }
  0x34   :  { %v61_v10 = vsel %vm60_vm0, %v59_v8, 0 }
  0x35   :  { %v63_v11 = vand.u32 31, %v61_v10  ;;  %v62_v13 = vshrl.u32 %v61_v10, 5 }
  0x37   :  { %v64_v14 = vsub.s32 32, %v63_v11  ;;  %v66_v16 = vshll.u32 %v389_v15, %v63_v11  ;;  %v69_v18 = vshll.u32 %v390_v17, %v63_v11  ;;  %v72_v20 = vshll.u32 %v391_v19, %v63_v11 }
  0x38   :  { %v75_v22 = vshll.u32 %v392_v21, %v63_v11  ;;  %v78_v24 = vshll.u32 %v393_v23, %v63_v11  ;;  %vm81_vm1 = vcmp.lt.s32.totalorder %v62_v13, 1  ;;  %vm84_vm2 = vcmp.lt.s32.totalorder %v62_v13, 4 }
  0x39   :  { %v65_v25 = vshrl.u32 %v389_v15, %v64_v14  ;;  %v67_v26 = vshrl.u32 %v390_v17, %v64_v14  ;;  %v70_v27 = vshrl.u32 %v391_v19, %v64_v14  ;;  %v73_v28 = vshrl.u32 %v392_v21, %v64_v14 }
  0x3a   :  { %v76_v29 = vshrl.u32 %v393_v23, %v64_v14  ;;  %v79_v31 = vshrl.u32 %v394_v30, %v64_v14  ;;  %vm82_vm3 = vcmp.lt.s32.totalorder %v62_v13, 2  ;;  %vm83_vm4 = vcmp.lt.s32.totalorder %v62_v13, 3 }
  0x3b   :  { %v68_v33 = vor.u32 %v67_v26, %v66_v16  ;;  %v71_v34 = vor.u32 %v70_v27, %v69_v18  ;;  %v74_v35 = vor.u32 %v73_v28, %v72_v20 }
  0x3c   :  { %v77_v36 = vor.u32 %v76_v29, %v75_v22  ;;  %v80_v37 = vor.u32 %v79_v31, %v78_v24  ;;  %v258_v24 = vlaneseq }
  0x3d   :  { %v85_v38 = vsel %vm81_vm1, %v65_v25, %v68_v33  ;;  %v86_v39 = vsel %vm84_vm2, %v74_v35, 2102212464  ;;  %v89_v40 = vsel %vm81_vm1, %v68_v33, %v71_v34  ;;  %v93_v41 = vsel %vm81_vm1, %v71_v34, %v74_v35 }
  0x3e   :  { %v87_v42 = vsel %vm83_vm4, %v71_v34, %v86_v39  ;;  %v90_v43 = vsel %vm84_vm2, %v77_v36, 920167782  ;;  %v94_v44 = vsel %vm84_vm2, %v80_v37, 1326507024  ;;  %v259_v27 = vshrl.u32 %v258_v24, 7 }
  0x3f   :  { %v91_v45 = vsel %vm83_vm4, %v74_v35, %v90_v43  ;;  %v95_v46 = vsel %vm83_vm4, %v77_v36, %v94_v44  ;;  %v88_v47 = vsel %vm82_vm3, %v85_v38, %v87_v42 }
  0x40   :  { %v92_v48 = vsel %vm82_vm3, %v89_v40, %v91_v45  ;;  %v96_v49 = vsel %vm82_vm3, %v93_v41, %v95_v46  ;;  %v104_v54 = vmul.u32 %v97_v32, %v88_v47  ;;  %v260_v33 = vsub.s32 0, %v259_v27  ;;  %v256_v40 = vld [vmem:[%s487_s3] sm:$0xff]  ;;  %v264_v41 = vld [vmem:[#allocation5] sm:$0xff] }
  0x41   :  { %v454_v50 = vmul.u32.u64.low %v97_v32, %v96_v49  ;;  %v455_v51 = vmul.u32.u64.high %v97_v32, %v96_v49, %v454_v50  ;;  %v457_v52 = vmul.u32.u64.low %v97_v32, %v92_v48  ;;  %v458_v53 = vmul.u32.u64.high %v97_v32, %v92_v48, %v457_v52 }
  0x43   :  { %vm106_vm5 = vc.u32 %v455_v51, %v457_v52  ;;  %v107_v55 = vadd.s32 1, %v458_v53  ;;  %v105_v2 = vadd.s32 %v457_v52, %v455_v51 }
  0x45   :  { %v108_v56 = vsel %vm106_vm5, %v107_v55, %v458_v53 }
  0x46   :  { %v109_v57 = vadd.s32 %v108_v56, %v104_v54 }
  0x48   :  { %v110_v58 = vadd.s32 536870912, %v109_v57 }
  0x4a   :  { %v111_v59 = vshrl.u32 %v110_v58, 30 }
  0x4c   :  { %v112_v60 = vshll.u32 %v111_v59, 30  ;;  %v135_v16 = vsub.s32 4, %v111_v59 }
  0x4e   :  { %v113_v61 = vsub.s32 %v109_v57, %v112_v60  ;;  %v136_v19 = vsel %vm51_vm7, %v135_v16, %v111_v59 }
  0x4f   :  { %v138_v22 = vsel %vm50_vm8, 0, %v136_v19 }
  0x50   :  { %v115_v62 = vsub.s32 0, %v113_v61  ;;  %v142_v23 = vadd.s32 3, %v138_v22  ;;  %v246_v26 = vand.u32 3, %v138_v22 }
  0x52   :  { %v291_v63 = vmin.u32 %v115_v62, %v113_v61  ;;  %v143_v25 = vand.u32 3, %v142_v23  ;;  %vm251_vm10 = vcmp.eq.s32.totalorder %v246_v26, 2  ;;  %vm248_vm12 = vcmp.eq.s32.totalorder %v246_v26, 0 }
  0x53   :  { %vm247_vm14 = vcmp.lt.s32.totalorder %v246_v26, 2 }
  0x54   :  { %v117_v0 = vclz %v291_v63  ;;  %vm148_vm9 = vcmp.eq.s32.totalorder %v143_v25, 2  ;;  %vm145_vm11 = vcmp.eq.s32.totalorder %v143_v25, 0  ;;  %vm144_vm13 = vcmp.lt.s32.totalorder %v143_v25, 2 }
  0x56   :  { %v292_v1 = vadd.s32 4294967294, %v117_v0 }
  0x58   :  { %vm293_vm6 = vcmp.lt.s32.totalorder %v292_v1, 0 }
  0x59   :  { %v120_v4 = vsel %vm293_vm6, 0, %v292_v1 }
  0x5a   :  { %v121_v5 = vsub.s32 32, %v120_v4  ;;  %v122_v7 = vshll.u32 %v113_v61, %v120_v4  ;;  %v125_v8 = vsub.s32 4294967266, %v120_v4 }
  0x5c   :  { %v123_v9 = vshrl.u32 %v105_v2, %v121_v5  ;;  %v126_v10 = vadd.s32 127, %v125_v8 }
  0x5e   :  { %v124_v11 = vor.u32 %v123_v9, %v122_v7  ;;  %v127_v12 = vshll.u32 %v126_v10, 23 }
  0x60   :  { %v128_v13 = vor.u32 4788187, %v127_v12  ;;  %v131_v14 = vcvt.s32.f32 %v124_v11 }
  0x62   :  { %v129_v15 = vand.u32 2147483647, %v128_v13 }
  0x64   :  { %v132_v17 = vmul.f32 %v131_v14, %v129_v15 }
  0x66   :  { %v133_v18 = vxor.u32 2147483648, %v132_v17 }
  0x68   :  { %v134_v20 = vsel %vm51_vm7, %v133_v18, %v132_v17 }
  0x69   :  { %v137_v21 = vsel %vm50_vm8, %v448_v3, %v134_v20 }
  0x6a   :  { %311 = vcosq.f32 %v137_v21 }
  0x6b   :  { %313 = vsinq.f32 %v137_v21 }
  0x74   :  { %v312_v28 = vpop.eup %311 }
  0x75   :  { %v314_v29 = vpop.eup %313  ;;  %v149_v30 = vxor.u32 2147483648, %v312_v28 }
  0x76   :  { %v146_v6 = vxor.u32 2147483648, %v314_v29 }
  0x77   :  { %v150_v31 = vsel %vm148_vm9, %v149_v30, %v314_v29  ;;  %v253_v32 = vsel %vm251_vm10, %v149_v30, %v314_v29 }
  0x78   :  { %v147_v34 = vsel %vm145_vm11, %v312_v28, %v146_v6  ;;  %v250_v35 = vsel %vm248_vm12, %v312_v28, %v146_v6 }
  0x79   :  { %v151_v36 = vsel %vm144_vm13, %v147_v34, %v150_v31  ;;  %v254_v37 = vsel %vm247_vm14, %v250_v35, %v253_v32 }
  0x7a   :  { %v152_v38 = vsel %vm141_vm15, nan, %v151_v36  ;;  %v255_v39 = vsel %vm141_vm15, nan, %v254_v37 }
  0x7b   :  { %v261_v42 = vrot.slane %v152_v38, %v260_v33  ;;  %v269_v43 = vrot.slane %v255_v39, %v260_v33 }
  0x7d   :  { %v263_v44 = vmul.f32 %v261_v42, %v256_v40  ;;  %v271_v3 = vmul.f32 %v269_v43, %v264_v41 }
  0x7f   :  { %v272_v45 = vadd.f32 %v271_v3, %v263_v44 }
  0x81   :  { %273 = vst [vmem:[#allocation7] sm:$0xff] %v272_v45 }
  0x82   :  { %370 = shalt.err (!%p367_p6)
}
  0x83   :  { %s371_s3 = scalar_lea.hbm %s488_s4, 128 }
  0x84   :  { %p372_p7 = scmp.ne.s32.totalorder %s488_s4, %s371_s3  ;;  %p375_p8 = scmp.lt.u32.totalorder %s371_s3, %s488_s4 }
  0x86   :  { %p377_p9 = pnand %p375_p8, %p372_p7 }
  0x88   :  { %380 = shalt.err (!%p377_p9)
}
  0x89   :  { %283 = dma.vmem_to_hbm [thread:$0]  %s281_s16, 128, %s488_s4, [#allocation4]  }
  0x8a   :  { %385 = dma.done.wait [#allocation4], 128  }
  0x8b   :  { %386 = vsyncadd [#allocation4], 4294967168 }
  0x8c   :  { %287 = vsyncpa [#allocation3], 1 }
  0x8d   :  { %288 = vsyncpa [#allocation6], 1 }
  0x8e   :  { %289 = vsyncpa [#allocation4], 1 }

</bundles_post_ra>
